<compile_context>
chip_gen: v6e
topology: v6e:2x2x1
jax: 0.10.0
libtpu: 0.0.40
codegen_flags: <defaults>
</compile_context>

<pallas_src>
import jax
import jax.numpy as jnp
from jax.experimental import pallas as pl
from jax.experimental.pallas import tpu as pltpu


# ---------------------------------------------------------------------------
# Kernel 1: pivoted raw-moment accumulation over N
#   p_ref  : (3, BB, TN) block of the (3, Bp, Np) coordinate-major cloud
#   piv_ref: (3, BB, 1)  per-batch pivot
#   out_ref: (BB, 16)    packed [S2 row-major (9) | S1 (3) | pad (4)]
# ---------------------------------------------------------------------------
def _moments_kernel(p_ref, piv_ref, out_ref):
    @pl.when(pl.program_id(1) == 0)
    def _init():
        out_ref[...] = jnp.zeros_like(out_ref)

    # (BB, TN) coordinate planes, pivot-centered (pivot broadcast over lanes).
    x0 = p_ref[0] - piv_ref[0]
    x1 = p_ref[1] - piv_ref[1]
    x2 = p_ref[2] - piv_ref[2]

    def rs(a):                                      # lane (XLU) reduction
        return jnp.sum(a, axis=-1, keepdims=True)   # (BB, 1)

    # 6 unique second-moment entries (VPU) + 3 first moments; no MXU.
    s00 = rs(x0 * x0); s01 = rs(x0 * x1); s02 = rs(x0 * x2)
    s11 = rs(x1 * x1); s12 = rs(x1 * x2); s22 = rs(x2 * x2)
    m0 = rs(x0); m1 = rs(x1); m2 = rs(x2)
    pad = jnp.zeros((x0.shape[0], 4), jnp.float32)

    upd = jnp.concatenate(
        [s00, s01, s02,
         s01, s11, s12,
         s02, s12, s22,
         m0, m1, m2, pad], axis=-1)                 # (BB, 16)
    out_ref[...] += upd


def _packed_moments(P):
    """P: (B, N, 3) float32 -> (packed (B, 16), pivot (B, 3))."""
    B, N, _ = P.shape
    pivot = P[:, 0, :]                                   # (B, 3)
    P3 = jnp.transpose(P, (2, 0, 1))                     # (3, B, N)
    piv3 = jnp.transpose(pivot, (1, 0))[:, :, None]      # (3, B, 1)

    # Batch tiling: BB batches per block -> full sublanes once BB == 8.
    if B >= 8:
        BB = 8
        pad_b = (-B) % BB
    else:
        BB = B
        pad_b = 0
    # Point tiling: large lane tiles so BlockSpec double-buffering pipelines.
    TN_TARGET = 2048
    if N <= TN_TARGET:
        TN = N
        pad_n = 0
    else:
        TN = TN_TARGET
        pad_n = (-N) % TN

    if pad_b:
        P3 = jnp.pad(P3, ((0, 0), (0, pad_b), (0, 0)))
        piv3 = jnp.pad(piv3, ((0, 0), (0, pad_b), (0, 0)))
    if pad_n:
        # Pad points with the per-batch pivot so they contribute exactly zero
        # to the pivoted moments.
        fill = jnp.broadcast_to(piv3, (3, P3.shape[1], pad_n))
        P3 = jnp.concatenate([P3, fill], axis=-1)

    Bp, Np = P3.shape[1], P3.shape[2]
    grid = (Bp // BB, Np // TN)                          # reduction axis last

    cost = pl.CostEstimate(
        flops=int(18 * Bp * Np),
        transcendentals=0,
        bytes_accessed=int(4 * (3 * Bp * Np + 16 * Bp)))

    packed = pl.pallas_call(
        _moments_kernel,
        grid=grid,
        in_specs=[
            pl.BlockSpec((3, BB, TN), lambda b, n: (0, b, n)),
            pl.BlockSpec((3, BB, 1), lambda b, n: (0, b, 0)),
        ],
        out_specs=pl.BlockSpec((BB, 16), lambda b, n: (b, 0)),
        out_shape=jax.ShapeDtypeStruct((Bp, 16), jnp.float32),
        compiler_params=pltpu.CompilerParams(
            dimension_semantics=("parallel", "arbitrary")),
        cost_estimate=cost,
    )(P3, piv3)
    return packed[:B], pivot


def get_P_cov_and_cent(P):
    """cov as in RotoTrans.get_P_basis (before eigh); P_cent = P.mean(dim=1)."""
    P = P.astype(jnp.float32)
    B, N, _ = P.shape
    packed, pivot = _packed_moments(P)
    S2 = packed[:, 0:9].reshape(B, 3, 3)                 # sum (p-piv)(p-piv)^T
    S1 = packed[:, 9:12]                                 # sum (p-piv)
    n = jnp.float32(N)
    P_cent = pivot + S1 / n                              # == P.mean(dim=1)
    Cc = S2 - S1[:, :, None] * S1[:, None, :] / n        # sum_n xc xc^T (pivot cancels)
    sq = jnp.diagonal(Cc, axis1=-2, axis2=-1)            # (B,3) == x.norm(dim=1)**2
    cov = sq[:, :, None] * sq[:, None, :] * Cc / (n - 1.0)
    return cov, P_cent


# ---------------------------------------------------------------------------
# Kernel 2: all (c, b) rotations as one fused matmul (3C,3) @ (3,3B)
# ---------------------------------------------------------------------------
def _rot_kernel(q_ref, pt_ref, r_ref):
    r_ref[...] = jnp.dot(q_ref[...], pt_ref[...],
                         preferred_element_type=jnp.float32)


def _rotations(Q_basis, P_basis):
    """R[c,b] = Q_basis[c] @ P_basis[b]^T  ->  (C, B, 3, 3)."""
    C = Q_basis.shape[0]
    B = P_basis.shape[0]
    q2 = Q_basis.astype(jnp.float32).reshape(3 * C, 3)       # rows index (c, i)
    p2t = P_basis.astype(jnp.float32).reshape(3 * B, 3).T    # (3, 3B), cols (b, k)
    cost = pl.CostEstimate(flops=int(2 * 3 * C * 3 * B * 3),
                           transcendentals=0,
                           bytes_accessed=int(4 * (9 * C + 9 * B + 9 * C * B)))
    M = pl.pallas_call(
        _rot_kernel,
        out_shape=jax.ShapeDtypeStruct((3 * C, 3 * B), jnp.float32),
        cost_estimate=cost,
    )(q2, p2t)                                               # M[3c+i, 3b+k]
    return M.reshape(C, 3, B, 3).transpose(0, 2, 1, 3)       # (C, B, 3, 3)


# ---------------------------------------------------------------------------
# Plain-JAX glue (tiny 3-vector math + eigh + parameter synthesis)
# ---------------------------------------------------------------------------
def _schmidt_cross(M, eps=1e-12):
    """Rows M[..., i, :] are vectors; return a right-handed orthonormal row basis."""
    v1 = M[..., 0, :]
    v2 = M[..., 1, :]
    e1 = v1 / (jnp.linalg.norm(v1, axis=-1, keepdims=True) + eps)
    u2 = v2 - jnp.sum(v2 * e1, axis=-1, keepdims=True) * e1
    e2 = u2 / (jnp.linalg.norm(u2, axis=-1, keepdims=True) + eps)
    e3 = jnp.cross(e1, e2)
    return jnp.stack([e1, e2, e3], axis=-2)


# TODO(synk): Schmidt_cross_2vec / Schmidt_cross_3vec sources are not provided;
# both are implemented as Gram-Schmidt on the first two row-vectors + cross product.
Schmidt_cross_2vec = _schmidt_cross
Schmidt_cross_3vec = _schmidt_cross


def make_gene_params(key, C):
    # TODO(synk): GENE submodule source not provided; synthesize deterministic
    # per-channel orthonormal target bases Q_basis (C,3,3), centroids Q_cent (C,3)
    # and a dummy scalar cost1.
    k1, k2 = jax.random.split(key)
    Q_basis = Schmidt_cross_3vec(jax.random.normal(k1, (C, 3, 3), jnp.float32))
    Q_cent = jax.random.normal(k2, (C, 3), jnp.float32)
    cost1 = jnp.float32(0.0)
    return Q_basis, Q_cent, cost1


def P_basis_from_cov(cov):
    # TODO(synk): torch.linalg.eigh has no clean in-kernel Pallas equivalent;
    # done in plain JAX on the tiny (B,3,3) covariance (eigenvector sign/order
    # may differ from torch; the Schmidt step absorbs most of it).
    _, vec = jnp.linalg.eigh(cov, UPLO='U')                  # columns = eigenvectors
    P_basis = Schmidt_cross_3vec(jnp.swapaxes(vec, -1, -2))  # get_P_basis tail
    P_basis = Schmidt_cross_2vec(P_basis)                    # forward() step
    return P_basis


def roto_trans_forward(P, Q_basis, Q_cent, cost1):
    """P: (B, N, 3). Returns R: (C, B, 3, 3), t: (C, B, 1, 3), cost1."""
    B, N, d = P.shape
    assert d == 3, "RotoTrans operates on 3-D point clouds"
    cov, P_cent = get_P_cov_and_cent(P)                      # Pallas kernel 1
    P_basis = P_basis_from_cov(cov)                          # plain JAX (eigh + Schmidt)
    R = _rotations(Q_basis, P_basis)                         # Pallas kernel 2
    t = Q_cent[:, None, None, :] - P_cent[None, :, None, :]  # (C, B, 1, 3), plain JAX
    return R, t, cost1


if __name__ == "__main__":
    B, N, C = 2, 16, 4
    key = jax.random.PRNGKey(0)
    kp, kg, kw = jax.random.split(key, 3)

    P = jax.random.normal(kp, (B, N, 3), jnp.float32)
    Q_basis, Q_cent, cost1 = make_gene_params(kg, C)
    # nn.Parameter weight_C (C, 1) is defined in __init__ but unused in forward.
    weight_C = jax.random.normal(kw, (C, 1), jnp.float32)

    R, t, c1 = roto_trans_forward(P, Q_basis, Q_cent, cost1)
    jax.block_until_ready((R, t, c1))

    assert R.shape == (C, B, 3, 3)
    assert t.shape == (C, B, 1, 3)
    assert bool(jnp.all(jnp.isfinite(R))) and bool(jnp.all(jnp.isfinite(t)))

    # --- numerical checks against a plain-JAX (torch-equivalent) reference ---
    Pf = P.astype(jnp.float32)
    cov_k, cent_k = get_P_cov_and_cent(Pf)
    mean_ref = jnp.mean(Pf, axis=1, keepdims=True)
    xc = Pf - mean_ref
    sq = jnp.sum(xc * xc, axis=1, keepdims=True)            # x.norm(dim=1)**2
    xs = xc * sq
    cov_ref = jnp.einsum('bni,bnj->bij', xs, xs) / (N - 1)
    assert bool(jnp.allclose(cov_k, cov_ref, rtol=1e-3, atol=1e-2))
    assert bool(jnp.allclose(cent_k, mean_ref[:, 0, :], rtol=1e-5, atol=1e-5))

    P_basis = P_basis_from_cov(cov_k)
    R_ref = jnp.einsum('cij,bkj->cbik', Q_basis, P_basis)
    t_ref = Q_cent[:, None, None, :] - cent_k[None, :, None, :]
    assert bool(jnp.allclose(R, R_ref, rtol=1e-3, atol=1e-3))
    assert bool(jnp.allclose(t, t_ref, rtol=1e-5, atol=1e-5))

    print("KERNEL_OK")
</pallas_src>

<mosaic_0001>
module attributes {stable_mosaic.version = 11 : i64} {
  func.func @_moments_kernel(%arg0: i32, %arg1: i32, %arg2: memref<3x2x16xf32, #tpu.memory_space<vmem>>, %arg3: memref<3x2x1xf32, #tpu.memory_space<vmem>>, %arg4: memref<2x16xf32, #tpu.memory_space<vmem>>) attributes {dimension_semantics = [#tpu.dimension_semantics<parallel>, #tpu.dimension_semantics<arbitrary>], iteration_bounds = array<i64: 1, 1>, scalar_prefetch = 0 : i64, scratch_operands = 0 : i64, tpu.core_type = #tpu.core_type<tc>, window_params = [{transform_indices = @transform_0, window_bounds = array<i64: 3, 2, 16>}, {transform_indices = @transform_1, window_bounds = array<i64: 3, 2, 1>}, {transform_indices = @transform_2, window_bounds = array<i64: 2, 16>}]} {
    %c0_i32 = arith.constant 0 : i32
    %0 = arith.cmpi eq, %arg1, %c0_i32 : i32
    %1 = arith.extui %0 : i1 to i32
    %c0_i32_0 = arith.constant 0 : i32
    %2 = arith.cmpi ne, %1, %c0_i32_0 : i32
    scf.if %2 {
      %cst_29 = arith.constant 0.000000e+00 : f32
      %50 = vector.broadcast %cst_29 : f32 to vector<2x16xf32>
      %c0_30 = arith.constant 0 : index
      %c0_31 = arith.constant 0 : index
      %51 = vector.load %arg4[%c0_30, %c0_31] : memref<2x16xf32, #tpu.memory_space<vmem>>, vector<2x16xf32>
      tpu.vector_store %arg4[%c0_30, %c0_31], %50 {strides = array<i32>} : memref<2x16xf32, #tpu.memory_space<vmem>>, vector<2x16xf32>,
    } else {
    }
    %c0 = arith.constant 0 : index
    %c0_1 = arith.constant 0 : index
    %c0_2 = arith.constant 0 : index
    %3 = vector.load %arg2[%c0, %c0_1, %c0_2] : memref<3x2x16xf32, #tpu.memory_space<vmem>>, vector<1x2x16xf32>
    %4 = vector.shape_cast %3 : vector<1x2x16xf32> to vector<2x16xf32>
    %c0_3 = arith.constant 0 : index
    %c0_4 = arith.constant 0 : index
    %c0_5 = arith.constant 0 : index
    %5 = vector.load %arg3[%c0_3, %c0_4, %c0_5] : memref<3x2x1xf32, #tpu.memory_space<vmem>>, vector<1x2x1xf32>
    %6 = vector.shape_cast %5 : vector<1x2x1xf32> to vector<2x1xf32>
    %7 = vector.broadcast %6 : vector<2x1xf32> to vector<2x16xf32>
    %8 = arith.subf %4, %7 : vector<2x16xf32>
    %c1 = arith.constant 1 : index
    %c0_6 = arith.constant 0 : index
    %c0_7 = arith.constant 0 : index
    %9 = vector.load %arg2[%c1, %c0_6, %c0_7] : memref<3x2x16xf32, #tpu.memory_space<vmem>>, vector<1x2x16xf32>
    %10 = vector.shape_cast %9 : vector<1x2x16xf32> to vector<2x16xf32>
    %c1_8 = arith.constant 1 : index
    %c0_9 = arith.constant 0 : index
    %c0_10 = arith.constant 0 : index
    %11 = vector.load %arg3[%c1_8, %c0_9, %c0_10] : memref<3x2x1xf32, #tpu.memory_space<vmem>>, vector<1x2x1xf32>
    %12 = vector.shape_cast %11 : vector<1x2x1xf32> to vector<2x1xf32>
    %13 = vector.broadcast %12 : vector<2x1xf32> to vector<2x16xf32>
    %14 = arith.subf %10, %13 : vector<2x16xf32>
    %c2 = arith.constant 2 : index
    %c0_11 = arith.constant 0 : index
    %c0_12 = arith.constant 0 : index
    %15 = vector.load %arg2[%c2, %c0_11, %c0_12] : memref<3x2x16xf32, #tpu.memory_space<vmem>>, vector<1x2x16xf32>
    %16 = vector.shape_cast %15 : vector<1x2x16xf32> to vector<2x16xf32>
    %c2_13 = arith.constant 2 : index
    %c0_14 = arith.constant 0 : index
    %c0_15 = arith.constant 0 : index
    %17 = vector.load %arg3[%c2_13, %c0_14, %c0_15] : memref<3x2x1xf32, #tpu.memory_space<vmem>>, vector<1x2x1xf32>
    %18 = vector.shape_cast %17 : vector<1x2x1xf32> to vector<2x1xf32>
    %19 = vector.broadcast %18 : vector<2x1xf32> to vector<2x16xf32>
    %20 = arith.subf %16, %19 : vector<2x16xf32>
    %21 = arith.mulf %8, %8 : vector<2x16xf32>
    %cst = arith.constant dense<0.000000e+00> : vector<2xf32>
    %22 = vector.multi_reduction <add>, %21, %cst [1] : vector<2x16xf32> to vector<2xf32>
    %23 = vector.shape_cast %22 : vector<2xf32> to vector<2x1xf32>
    %24 = arith.mulf %8, %14 : vector<2x16xf32>
    %cst_16 = arith.constant dense<0.000000e+00> : vector<2xf32>
    %25 = vector.multi_reduction <add>, %24, %cst_16 [1] : vector<2x16xf32> to vector<2xf32>
    %26 = vector.shape_cast %25 : vector<2xf32> to vector<2x1xf32>
    %27 = arith.mulf %8, %20 : vector<2x16xf32>
    %cst_17 = arith.constant dense<0.000000e+00> : vector<2xf32>
    %28 = vector.multi_reduction <add>, %27, %cst_17 [1] : vector<2x16xf32> to vector<2xf32>
    %29 = vector.shape_cast %28 : vector<2xf32> to vector<2x1xf32>
    %30 = arith.mulf %14, %14 : vector<2x16xf32>
    %cst_18 = arith.constant dense<0.000000e+00> : vector<2xf32>
    %31 = vector.multi_reduction <add>, %30, %cst_18 [1] : vector<2x16xf32> to vector<2xf32>
    %32 = vector.shape_cast %31 : vector<2xf32> to vector<2x1xf32>
    %33 = arith.mulf %14, %20 : vector<2x16xf32>
    %cst_19 = arith.constant dense<0.000000e+00> : vector<2xf32>
    %34 = vector.multi_reduction <add>, %33, %cst_19 [1] : vector<2x16xf32> to vector<2xf32>
    %35 = vector.shape_cast %34 : vector<2xf32> to vector<2x1xf32>
    %36 = arith.mulf %20, %20 : vector<2x16xf32>
    %cst_20 = arith.constant dense<0.000000e+00> : vector<2xf32>
    %37 = vector.multi_reduction <add>, %36, %cst_20 [1] : vector<2x16xf32> to vector<2xf32>
    %38 = vector.shape_cast %37 : vector<2xf32> to vector<2x1xf32>
    %cst_21 = arith.constant dense<0.000000e+00> : vector<2xf32>
    %39 = vector.multi_reduction <add>, %8, %cst_21 [1] : vector<2x16xf32> to vector<2xf32>
    %40 = vector.shape_cast %39 : vector<2xf32> to vector<2x1xf32>
    %cst_22 = arith.constant dense<0.000000e+00> : vector<2xf32>
    %41 = vector.multi_reduction <add>, %14, %cst_22 [1] : vector<2x16xf32> to vector<2xf32>
    %42 = vector.shape_cast %41 : vector<2xf32> to vector<2x1xf32>
    %cst_23 = arith.constant dense<0.000000e+00> : vector<2xf32>
    %43 = vector.multi_reduction <add>, %20, %cst_23 [1] : vector<2x16xf32> to vector<2xf32>
    %44 = vector.shape_cast %43 : vector<2xf32> to vector<2x1xf32>
    %cst_24 = arith.constant 0.000000e+00 : f32
    %45 = vector.broadcast %cst_24 : f32 to vector<2x4xf32>
    %46 = tpu.concatenate %23, %26, %29, %26, %32, %35, %29, %35, %38, %40, %42, %44, %45 in 1 : vector<2x1xf32>, vector<2x1xf32>, vector<2x1xf32>, vector<2x1xf32>, vector<2x1xf32>, vector<2x1xf32>, vector<2x1xf32>, vector<2x1xf32>, vector<2x1xf32>, vector<2x1xf32>, vector<2x1xf32>, vector<2x1xf32>, vector<2x4xf32> -> vector<2x16xf32>
    %c0_25 = arith.constant 0 : index
    %c0_26 = arith.constant 0 : index
    %47 = vector.load %arg4[%c0_25, %c0_26] : memref<2x16xf32, #tpu.memory_space<vmem>>, vector<2x16xf32>
    %48 = arith.addf %47, %46 : vector<2x16xf32>
    %c0_27 = arith.constant 0 : index
    %c0_28 = arith.constant 0 : index
    %49 = vector.load %arg4[%c0_27, %c0_28] : memref<2x16xf32, #tpu.memory_space<vmem>>, vector<2x16xf32>
    tpu.vector_store %arg4[%c0_27, %c0_28], %48 {strides = array<i32>} : memref<2x16xf32, #tpu.memory_space<vmem>>, vector<2x16xf32>,
    return
  }
  func.func @transform_0(%arg0: i32, %arg1: i32) -> (i32, i32, i32) {
    %c0_i32 = arith.constant 0 : i32
    %c0_i32_0 = arith.constant 0 : i32
    return %c0_i32, %arg0, %arg1 : i32, i32, i32
  }
  func.func @transform_1(%arg0: i32, %arg1: i32) -> (i32, i32, i32) {
    %c0_i32 = arith.constant 0 : i32
    %c0_i32_0 = arith.constant 0 : i32
    %c0_i32_1 = arith.constant 0 : i32
    return %c0_i32, %arg0, %c0_i32_0 : i32, i32, i32
  }
  func.func @transform_2(%arg0: i32, %arg1: i32) -> (i32, i32) {
    %c0_i32 = arith.constant 0 : i32
    %c0_i32_0 = arith.constant 0 : i32
    return %arg0, %c0_i32 : i32, i32
  }
}

</mosaic_0001>

<bundles_post_ra>
// kernel: tpu_custom_call.1
= control target key start
LH: loop header
LB: loop body
LE: loop exit
PB: predicated region body
PF: predicated region fallthrough
CT: control target
= control target key end

     0   :  { %v152_v2 = vmov 0   ;;  %s202_s0 = inlined_call_operand.vmem [shape: f32[3,2,16], index: 0, kind: input, shape index: {}]   ;;  %s203_s1 = inlined_call_operand.vmem [shape: f32[3,2,1], index: 1, kind: input, shape index: {}]   ;;  %s204_s2 = inlined_call_operand.hbm [shape: f32[2,16], index: 2, kind: output, shape index: {}]  }
   0x1   :  { %v124_v0 = vld [vmem:[%s203_s1 + $0x4] sm:$0x3]  ;;  %v19_v1 = vld [vmem:[%s203_s1] sm:$0x3]  ;;  %129 = vset.pattern.permute.xlu1 %v152_v2  ;;  %128 = vset.pattern.permute.xlu0 %v152_v2 }
   0x2   :  { %42 = vperm.xlu1 %129, %v124_v0   ;;  %22 = vperm.xlu0 %128, %v19_v1  }
   0x3   :  { %7 = vsyncpa [#allocation3], 0  ;;  %v122_v3 = vld [vmem:[%s203_s1 + $0x2] sm:$0x3]  ;;  %v18_v4 = vld [vmem:[%s202_s0] sm:$0x3] }
   0x4   :  { %v123_v7 = vld [vmem:[%s202_s0 + $0x4] sm:$0x3]  ;;  %v121_v9 = vld [vmem:[%s202_s0 + $0x2] sm:$0x3]  ;;  %vm16_vm0 = vcmask 123904   ;;  %v153_v28 = vmov 0.0  }
   0x5   :  { %17 = vst.msk [vmem:[#allocation2] sm:$0x3] %vm16_vm0, %v153_v28  ;;  %vm80_vm1 = vcmask 7168   ;;  %vm82_vm2 = vcmask 15360   ;;  %vm84_vm3 = vcmask 23552   ;;  %vm86_vm4 = vcmask 31744  }
   0x6   :  { %32 = vperm.xlu0 %128, %v122_v3   ;;  %vm88_vm5 = vcmask 39936   ;;  %vm90_vm6 = vcmask 48128   ;;  %vm92_vm7 = vcmask 56320   ;;  %vm94_vm8 = vcmask 64512   ;;  %s154_s0 = smov [#allocation2]  }
   0x7   :  { %vm96_vm9 = vcmask 72704   ;;  %vm98_vm10 = vcmask 80896   ;;  %vm100_vm11 = vcmask 89088   ;;  %vm102_vm12 = vcmask 97280   ;;  %s113_s1 = sshll.u32 %s154_s0, 4  ;;  %s114_s1 = int_to_ptr.vmem [resolvable:$true] %s113_s1 }
   0x8   :  { %s130_s21 = scalar_lea.vmem %s114_s1, 32  ;;  %p135_p1 = scmp.lt.s32.totalorder %s114_s1, %s114_s1 }
   0x9   :  { %p131_p0 = scmp.ne.s32.totalorder %s114_s1, %s130_s21  ;;  %p136_p2 = scmp.lt.s32.totalorder %s130_s21, %s130_s21 }
   0xb   :  { %p137_p3 = por %p136_p2, %p135_p1 }
   0xc   :  { %v104_v48 = vld [vmem:[#allocation2] sm:$0x3] }
   0xd   :  { %p138_p4 = pnand %p137_p3, %p131_p0 }
  0x7d   :  { %v23_v5 = vpop.permute.xlu0 %22  ;;  %v43_v8 = vpop.permute.xlu1 %42 }
  0x7e   :  { %v25_v6 = vsub.f32 %v18_v4, %v23_v5  ;;  %v45_v12 = vsub.f32 %v123_v7, %v43_v8 }
  0x80   :  { %v46_v10 = vmul.f32 %v25_v6, %v25_v6  ;;  %v67_v17 = vmul.f32 %v45_v12, %v45_v12  ;;  %v55_v20 = vmul.f32 %v45_v12, %v25_v6  ;;  %v71_v26 = vsel %vm16_vm0, %v25_v6, 0.0 }
  0x81   :  { %v33_v11 = vpop.permute.xlu0 %32  ;;  %v77_v27 = vsel %vm16_vm0, %v45_v12, 0.0 }
  0x82   :  { %v35_v13 = vsub.f32 %v121_v9, %v33_v11  ;;  %v48_v14 = vsel %vm16_vm0, %v46_v10, 0.0  ;;  %v68_v21 = vsel %vm16_vm0, %v67_v17, 0.0  ;;  %v56_v22 = vsel %vm16_vm0, %v55_v20, 0.0 }
  0x83   :  { %49 = vadd.xlane.f32.xlu1 %v48_v14 }
  0x84   :  { %v51_v15 = vmul.f32 %v35_v13, %v25_v6  ;;  %v59_v16 = vmul.f32 %v35_v13, %v35_v13  ;;  %v63_v23 = vmul.f32 %v45_v12, %v35_v13  ;;  %v74_v25 = vsel %vm16_vm0, %v35_v13, 0.0 }
  0x86   :  { %v52_v18 = vsel %vm16_vm0, %v51_v15, 0.0  ;;  %v60_v19 = vsel %vm16_vm0, %v59_v16, 0.0  ;;  %v64_v24 = vsel %vm16_vm0, %v63_v23, 0.0 }
  0x87   :  { %53 = vadd.xlane.f32.xlu0 %v52_v18  ;;  %61 = vadd.xlane.f32.xlu1 %v60_v19 }
  0x8b   :  { %57 = vadd.xlane.f32.xlu0 %v56_v22  ;;  %69 = vadd.xlane.f32.xlu1 %v68_v21 }
  0x8f   :  { %65 = vadd.xlane.f32.xlu0 %v64_v24  ;;  %75 = vadd.xlane.f32.xlu1 %v74_v25 }
  0x93   :  { %72 = vadd.xlane.f32.xlu0 %v71_v26 }
  0x97   :  { %78 = vadd.xlane.f32.xlu0 %v77_v27 }
 0x10c   :  { %v50_v29 = vpop.xlane.xlu1 %49 }
 0x110   :  { %v54_v30 = vpop.xlane.xlu0 %53  ;;  %v62_v31 = vpop.xlane.xlu1 %61 }
 0x111   :  { %v81_v32 = vsel %vm80_vm1, %v50_v29, %v54_v30 }
 0x114   :  { %v58_v33 = vpop.xlane.xlu0 %57  ;;  %v70_v38 = vpop.xlane.xlu1 %69 }
 0x115   :  { %v83_v34 = vsel %vm82_vm2, %v81_v32, %v58_v33 }
 0x116   :  { %v85_v35 = vsel %vm84_vm3, %v83_v34, %v54_v30 }
 0x117   :  { %v87_v36 = vsel %vm86_vm4, %v85_v35, %v62_v31 }
 0x118   :  { %v66_v37 = vpop.xlane.xlu0 %65  ;;  %v76_v45 = vpop.xlane.xlu1 %75 }
 0x119   :  { %v89_v39 = vsel %vm88_vm5, %v87_v36, %v66_v37 }
 0x11a   :  { %v91_v40 = vsel %vm90_vm6, %v89_v39, %v58_v33 }
 0x11b   :  { %v93_v41 = vsel %vm92_vm7, %v91_v40, %v66_v37 }
 0x11c   :  { %v73_v42 = vpop.xlane.xlu0 %72  ;;  %v95_v43 = vsel %vm94_vm8, %v93_v41, %v70_v38 }
 0x11d   :  { %v97_v44 = vsel %vm96_vm9, %v95_v43, %v73_v42 }
 0x11e   :  { %v99_v47 = vsel %vm98_vm10, %v97_v44, %v76_v45 }
 0x120   :  { %v79_v46 = vpop.xlane.xlu0 %78 }
 0x121   :  { %v101_v49 = vsel %vm100_vm11, %v99_v47, %v79_v46 }
 0x122   :  { %v103_v50 = vsel %vm102_vm12, %v101_v49, 0.0 }
 0x123   :  { %v105_v51 = vadd.f32 %v104_v48, %v103_v50 }
 0x125   :  { %106 = vst.msk [vmem:[#allocation2] sm:$0x3] %vm16_vm0, %v105_v51 }
 0x126   :  { %141 = shalt.err (!%p138_p4)
}
 0x127   :  { %116 = dma.vmem_to_hbm [thread:$0]  %s114_s1, 32, %s204_s2, [#allocation3]  }
 0x128   :  { %150 = dma.done.wait [#allocation3], 32  }
 0x129   :  { %151 = vsyncadd [#allocation3], 4294967264 }
 0x12a   :  { %120 = vsyncpa [#allocation3], 1 }

</bundles_post_ra>
